<compile_context>
chip_gen: v6e
topology: v6e:2x2x1
jax: 0.10.0
libtpu: 0.0.40
codegen_flags: <defaults>
</compile_context>

<pallas_src>
import functools

import jax
import jax.numpy as jnp
from jax.experimental import pallas as pl
from jax.experimental.pallas import tpu as pltpu

LANES = 128
SUBLANES = 8
ALIGN = SUBLANES * LANES          # 1024-element (one vreg) alignment
BLOCK_ROWS = 12288                # rows of 128 lanes per grid step (f32 6 MiB)
NUM_SPLITS = 2                    # partial sums -> v7x megacore can shard rows


def _bce_kernel(x_ref, lab_ref, out_ref, acc_ref, *, weight0, weight1,
                block_rows, rows, blocks_per_split):
    # weight0/weight1 are baked in as Python floats (changing them recompiles).
    # If they vary at runtime, pass them as SMEM scalars via scalar prefetch.
    i = pl.program_id(0)          # split index ("parallel")
    j = pl.program_id(1)          # row-block within the split ("arbitrary")

    @pl.when(j == 0)
    def _():
        acc_ref[...] = jnp.zeros_like(acc_ref)

    x = x_ref[...].astype(jnp.float32)    # in-register upcast if input is bf16
    lab = lab_ref[...]                    # native integer dtype, no wrapper cast

    pos = lab > 0
    p = jnp.where(pos, x, 1.0 - x)        # prob assigned to the true class
    p = jnp.maximum(p, 1e-6)              # x in [0,1] => upper clip redundant
    w = jnp.where(pos, jnp.float32(weight1), jnp.float32(weight0))

    # Logical first row of this block in the (rows, 128) slab.
    row0 = (i * blocks_per_split + j) * block_rows
    full_block = row0 + block_rows <= rows

    def accumulate(loss):
        # Fold (block_rows, 128) -> (8, 128) in registers: one VALU add per
        # input vreg, zero per-vreg VMEM accumulator traffic.
        acc_ref[...] += loss.reshape(block_rows // SUBLANES, SUBLANES,
                                     LANES).sum(axis=0)

    @pl.when(full_block)
    def _():  # fast path: no iota / compare / mask-select work
        accumulate(-w * jnp.log(p))

    @pl.when(jnp.logical_not(full_block))
    def _():  # partial last block / clamped ghost blocks: mask padding to 0
        row_idx = row0 + jax.lax.broadcasted_iota(jnp.int32, p.shape, 0)
        p_m = jnp.where(row_idx < rows, p, 1.0)      # log(1) == 0 for padding
        accumulate(-w * jnp.log(p_m))

    @pl.when(j == pl.num_programs(1) - 1)
    def _():
        out_ref[0, 0] = jnp.sum(acc_ref[...])


def _tail_loss_sum(x, lab, weight0, weight1):
    """Plain-jnp loss sum for a small (< 1024 element) ragged tail."""
    xf = x.astype(jnp.float32)
    pos = lab > 0
    p = jnp.maximum(jnp.where(pos, xf, 1.0 - xf), 1e-6)
    w = jnp.where(pos, jnp.float32(weight1), jnp.float32(weight0))
    return jnp.sum(-w * jnp.log(p))


def bce_loss_with_weight(inp, label, weight0, weight1):
    """inp: float (b,1,h,w) in [0,1]; label: int (b,1,h,w). Scalar mean loss."""
    n = inp.size
    x = inp.reshape(-1)        # contiguous reshape: free, no copy, no cast
    lab = label.reshape(-1)    # label stays in its native integer dtype

    main = (n // ALIGN) * ALIGN
    tail = n - main

    total = jnp.float32(0.0)
    if tail:
        # <= 1023 ragged elements: cheap suffix slice + plain jnp.
        total = total + _tail_loss_sum(x[main:], lab[main:], weight0, weight1)

    if main:
        if tail:
            # Misaligned sizes pay one aligned-prefix materialization (same
            # cost the old full-array pad paid); aligned sizes are zero-copy.
            x_main, lab_main = x[:main], lab[:main]
        else:
            x_main, lab_main = x, lab

        rows = main // LANES                     # multiple of 8 by construction
        x2 = x_main.reshape(rows, LANES)
        lab2 = lab_main.reshape(rows, LANES)

        block_rows = min(BLOCK_ROWS, rows)       # multiple of 8
        n_blocks = pl.cdiv(rows, block_rows)
        splits = NUM_SPLITS if n_blocks >= NUM_SPLITS else 1
        bps = pl.cdiv(n_blocks, splits)          # row-blocks per split

        kernel = functools.partial(
            _bce_kernel,
            weight0=float(weight0), weight1=float(weight1),
            block_rows=block_rows, rows=rows, blocks_per_split=bps)

        def in_idx(i, j):
            # Clamp: the last split may have fewer real blocks; clamped
            # re-reads are fully masked in-kernel (logical row_idx >= rows).
            return (jnp.minimum(i * bps + j, n_blocks - 1), 0)

        block = pl.BlockSpec((block_rows, LANES), in_idx)

        partials = pl.pallas_call(
            kernel,
            out_shape=jax.ShapeDtypeStruct((splits, 1), jnp.float32),
            grid_spec=pltpu.PrefetchScalarGridSpec(
                num_scalar_prefetch=0,
                grid=(splits, bps),
                in_specs=[block, block],
                out_specs=pl.BlockSpec((1, 1), lambda i, j: (i, 0),
                                       memory_space=pltpu.SMEM),
                scratch_shapes=[pltpu.VMEM((SUBLANES, LANES), jnp.float32)],
            ),
            compiler_params=pltpu.CompilerParams(
                # "parallel" lets the runtime shard the split axis across the
                # two v7x TensorCores; serial (and correct) on v5e/v6e.
                dimension_semantics=("parallel", "arbitrary"),
                vmem_limit_bytes=32 * 1024 * 1024),
        )(x2, lab2)
        total = total + jnp.sum(partials)

    return total / jnp.float32(n)


def _reference(inp, label, weight0, weight1):
    lab = label.astype(jnp.float32)
    loss = -(
        weight0 * jnp.log(jnp.clip(1.0 - inp, 1e-06, 1.0)) * (1.0 - lab)
        + weight1 * jnp.log(jnp.clip(inp, 1e-06, 1.0)) * lab
    )
    return jnp.mean(loss)


if __name__ == "__main__":
    # Deterministic "module parameters" (weight0, weight1 passed to __init__).
    weight0 = 0.3
    weight1 = 0.7

    key = jax.random.PRNGKey(0)

    shapes = [
        (2, 1, 32, 32),       # small spec-like shape, single tiny block
        (2, 1, 16, 16),       # < 1024 elements -> pure-jnp fallback path
        (2, 1, 301, 513),     # misaligned: kernel prefix + <1024-elem jnp tail
        (2, 1, 1200, 1024),   # 2 blocks / 2 splits, partial-block masked path
        (3, 1, 1200, 1024),   # 3 blocks / 2 splits, clamped "ghost" block
    ]
    for shape in shapes:
        key, k1, k2 = jax.random.split(key, 3)
        inp = jax.random.uniform(k1, shape, dtype=jnp.float32)
        label = jax.random.bernoulli(k2, 0.5, shape).astype(jnp.int32)

        out = jax.block_until_ready(
            bce_loss_with_weight(inp, label, weight0, weight1))
        ref = _reference(inp, label, weight0, weight1)
        assert jnp.allclose(out, ref, rtol=2e-5, atol=1e-6), (shape, out, ref)

    print("KERNEL_OK")
</pallas_src>

<mosaic_0001>
module attributes {stable_mosaic.version = 11 : i64} {
  func.func @_bce_kernel(%arg0: i32, %arg1: i32, %arg2: memref<16x128xf32, #tpu.memory_space<vmem>>, %arg3: memref<16x128xi32, #tpu.memory_space<vmem>>, %arg4: memref<1x1xf32, #tpu.memory_space<smem>>, %arg5: memref<8x128xf32, #tpu.memory_space<vmem>>) attributes {dimension_semantics = [#tpu.dimension_semantics<parallel>, #tpu.dimension_semantics<arbitrary>], iteration_bounds = array<i64: 1, 1>, scalar_prefetch = 0 : i64, scratch_operands = 1 : i64, tpu.core_type = #tpu.core_type<tc>, window_params = [{transform_indices = @transform_0, window_bounds = array<i64: 16, 128>}, {transform_indices = @transform_1, window_bounds = array<i64: 16, 128>}, {transform_indices = @transform_2, window_bounds = array<i64: 1, 1>}]} {
    %c0_i32 = arith.constant 0 : i32
    %0 = arith.cmpi eq, %arg1, %c0_i32 : i32
    %1 = arith.extui %0 : i1 to i32
    %c0_i32_0 = arith.constant 0 : i32
    %2 = arith.cmpi ne, %1, %c0_i32_0 : i32
    scf.if %2 {
      %cst_14 = arith.constant 0.000000e+00 : f32
      %28 = vector.broadcast %cst_14 : f32 to vector<8x128xf32>
      %c0_15 = arith.constant 0 : index
      %c0_16 = arith.constant 0 : index
      %29 = vector.load %arg5[%c0_15, %c0_16] : memref<8x128xf32, #tpu.memory_space<vmem>>, vector<8x128xf32>
      tpu.vector_store %arg5[%c0_15, %c0_16], %28 {strides = array<i32>} : memref<8x128xf32, #tpu.memory_space<vmem>>, vector<8x128xf32>,
    } else {
    }
    %c0 = arith.constant 0 : index
    %c0_1 = arith.constant 0 : index
    %3 = vector.load %arg2[%c0, %c0_1] : memref<16x128xf32, #tpu.memory_space<vmem>>, vector<16x128xf32>
    %c0_2 = arith.constant 0 : index
    %c0_3 = arith.constant 0 : index
    %4 = vector.load %arg3[%c0_2, %c0_3] : memref<16x128xi32, #tpu.memory_space<vmem>>, vector<16x128xi32>
    %c0_i32_4 = arith.constant 0 : i32
    %5 = vector.broadcast %c0_i32_4 : i32 to vector<16x128xi32>
    %6 = arith.cmpi sgt, %4, %5 : vector<16x128xi32>
    %cst = arith.constant 1.000000e+00 : f32
    %7 = vector.broadcast %cst : f32 to vector<16x128xf32>
    %8 = arith.subf %7, %3 : vector<16x128xf32>
    %9 = arith.select %6, %3, %8 : vector<16x128xi1>, vector<16x128xf32>
    %cst_5 = arith.constant 9.99999997E-7 : f32
    %10 = vector.broadcast %cst_5 : f32 to vector<16x128xf32>
    %11 = arith.maximumf %9, %10 : vector<16x128xf32>
    %cst_6 = arith.constant 0.699999988 : f32
    %cst_7 = arith.constant 3.000000e-01 : f32
    %12 = vector.broadcast %cst_6 : f32 to vector<16x128xf32>
    %13 = vector.broadcast %cst_7 : f32 to vector<16x128xf32>
    %14 = arith.select %6, %12, %13 : vector<16x128xi1>, vector<16x128xf32>
    %c1_i32 = arith.constant 1 : i32
    %15 = arith.muli %arg0, %c1_i32 : i32
    %16 = arith.addi %15, %arg1 : i32
    %c16_i32 = arith.constant 16 : i32
    %17 = arith.muli %16, %c16_i32 : i32
    %c16_i32_8 = arith.constant 16 : i32
    %18 = arith.addi %17, %c16_i32_8 : i32
    %c16_i32_9 = arith.constant 16 : i32
    %19 = arith.cmpi sle, %18, %c16_i32_9 : i32
    %20 = arith.extui %19 : i1 to i32
    %c0_i32_10 = arith.constant 0 : i32
    %21 = arith.cmpi ne, %20, %c0_i32_10 : i32
    scf.if %21 {
      %cst_14 = arith.constant 0.000000e+00 : f32
      %28 = vector.broadcast %cst_14 : f32 to vector<16x128xf32>
      %29 = arith.subf %28, %14 : vector<16x128xf32>
      %30 = math.log %11 : vector<16x128xf32>
      %31 = arith.mulf %29, %30 : vector<16x128xf32>
      %c0_15 = arith.constant 0 : index
      %c0_16 = arith.constant 0 : index
      %32 = vector.load %arg5[%c0_15, %c0_16] : memref<8x128xf32, #tpu.memory_space<vmem>>, vector<8x128xf32>
      %33 = vector.shape_cast %31 : vector<16x128xf32> to vector<2x8x128xf32>
      %cst_17 = arith.constant dense<0.000000e+00> : vector<8x128xf32>
      %34 = vector.multi_reduction <add>, %33, %cst_17 [0] : vector<2x8x128xf32> to vector<8x128xf32>
      %35 = arith.addf %32, %34 : vector<8x128xf32>
      %c0_18 = arith.constant 0 : index
      %c0_19 = arith.constant 0 : index
      %36 = vector.load %arg5[%c0_18, %c0_19] : memref<8x128xf32, #tpu.memory_space<vmem>>, vector<8x128xf32>
      tpu.vector_store %arg5[%c0_18, %c0_19], %35 {strides = array<i32>} : memref<8x128xf32, #tpu.memory_space<vmem>>, vector<8x128xf32>,
    } else {
    }
    %true = arith.constant true
    %22 = arith.xori %19, %true : i1
    %23 = arith.extui %22 : i1 to i32
    %c0_i32_11 = arith.constant 0 : i32
    %24 = arith.cmpi ne, %23, %c0_i32_11 : i32
    scf.if %24 {
      %28 = tpu.iota {dimensions = array<i32: 0>} : vector<16x128xi32>
      %29 = vector.broadcast %17 : i32 to vector<16x128xi32>
      %30 = arith.addi %29, %28 : vector<16x128xi32>
      %c16_i32_14 = arith.constant 16 : i32
      %31 = vector.broadcast %c16_i32_14 : i32 to vector<16x128xi32>
      %32 = arith.cmpi slt, %30, %31 : vector<16x128xi32>
      %cst_15 = arith.constant 1.000000e+00 : f32
      %33 = vector.broadcast %cst_15 : f32 to vector<16x128xf32>
      %34 = arith.select %32, %11, %33 : vector<16x128xi1>, vector<16x128xf32>
      %cst_16 = arith.constant 0.000000e+00 : f32
      %35 = vector.broadcast %cst_16 : f32 to vector<16x128xf32>
      %36 = arith.subf %35, %14 : vector<16x128xf32>
      %37 = math.log %34 : vector<16x128xf32>
      %38 = arith.mulf %36, %37 : vector<16x128xf32>
      %c0_17 = arith.constant 0 : index
      %c0_18 = arith.constant 0 : index
      %39 = vector.load %arg5[%c0_17, %c0_18] : memref<8x128xf32, #tpu.memory_space<vmem>>, vector<8x128xf32>
      %40 = vector.shape_cast %38 : vector<16x128xf32> to vector<2x8x128xf32>
      %cst_19 = arith.constant dense<0.000000e+00> : vector<8x128xf32>
      %41 = vector.multi_reduction <add>, %40, %cst_19 [0] : vector<2x8x128xf32> to vector<8x128xf32>
      %42 = arith.addf %39, %41 : vector<8x128xf32>
      %c0_20 = arith.constant 0 : index
      %c0_21 = arith.constant 0 : index
      %43 = vector.load %arg5[%c0_20, %c0_21] : memref<8x128xf32, #tpu.memory_space<vmem>>, vector<8x128xf32>
      tpu.vector_store %arg5[%c0_20, %c0_21], %42 {strides = array<i32>} : memref<8x128xf32, #tpu.memory_space<vmem>>, vector<8x128xf32>,
    } else {
    }
    %c0_i32_12 = arith.constant 0 : i32
    %25 = arith.cmpi eq, %arg1, %c0_i32_12 : i32
    %26 = arith.extui %25 : i1 to i32
    %c0_i32_13 = arith.constant 0 : i32
    %27 = arith.cmpi ne, %26, %c0_i32_13 : i32
    scf.if %27 {
      %c0_14 = arith.constant 0 : index
      %c0_15 = arith.constant 0 : index
      %28 = vector.load %arg5[%c0_14, %c0_15] : memref<8x128xf32, #tpu.memory_space<vmem>>, vector<8x128xf32>
      %29 = vector.shape_cast %28 : vector<8x128xf32> to vector<1x8x128xf32>
      %cst_16 = arith.constant dense<0.000000e+00> : vector<1xf32>
      %30 = vector.multi_reduction <add>, %29, %cst_16 [1, 2] : vector<1x8x128xf32> to vector<1xf32>
      %31 = vector.shape_cast %30 : vector<1xf32> to vector<1x1x1xf32>
      %32 = vector.extract %31[0, 0, 0] : f32 from vector<1x1x1xf32>
      %c0_17 = arith.constant 0 : index
      %c0_18 = arith.constant 0 : index
      %33 = memref.load %arg4[%c0_17, %c0_18] : memref<1x1xf32, #tpu.memory_space<smem>>
      memref.store %32, %arg4[%c0_17, %c0_18] : memref<1x1xf32, #tpu.memory_space<smem>>
    } else {
    }
    return
  }
  func.func @transform_0(%arg0: i32, %arg1: i32) -> (i32, i32) {
    %c1_i32 = arith.constant 1 : i32
    %0 = arith.muli %arg0, %c1_i32 : i32
    %1 = arith.addi %0, %arg1 : i32
    %c0_i32 = arith.constant 0 : i32
    %2 = arith.minsi %1, %c0_i32 : i32
    %c0_i32_0 = arith.constant 0 : i32
    %c0_i32_1 = arith.constant 0 : i32
    return %2, %c0_i32_0 : i32, i32
  }
  func.func @transform_1(%arg0: i32, %arg1: i32) -> (i32, i32) {
    %c1_i32 = arith.constant 1 : i32
    %0 = arith.muli %arg0, %c1_i32 : i32
    %1 = arith.addi %0, %arg1 : i32
    %c0_i32 = arith.constant 0 : i32
    %2 = arith.minsi %1, %c0_i32 : i32
    %c0_i32_0 = arith.constant 0 : i32
    %c0_i32_1 = arith.constant 0 : i32
    return %2, %c0_i32_0 : i32, i32
  }
  func.func @transform_2(%arg0: i32, %arg1: i32) -> (i32, i32) {
    %c0_i32 = arith.constant 0 : i32
    %c0_i32_0 = arith.constant 0 : i32
    return %arg0, %c0_i32 : i32, i32
  }
}

</mosaic_0001>

<bundles_post_ra>
// kernel: tpu_custom_call.1
= control target key start
LH: loop header
LB: loop body
LE: loop exit
PB: predicated region body
PF: predicated region fallthrough
CT: control target
= control target key end

     0   :  { %7 = vsyncpa [#allocation4], 0  ;;  %s254_s0 = inlined_call_operand.hbm [shape: f32[16,128], index: 0, kind: input, shape index: {}]   ;;  %s255_s1 = inlined_call_operand.hbm [shape: s32[16,128], index: 1, kind: input, shape index: {}]   ;;  %s256_s2 = inlined_call_operand.hbm [shape: f32[1,1], index: 2, kind: output, shape index: {}]  }
   0x1   :  { %8 = vsyncpa [#allocation7], 0 }
   0x2   :  { %9 = vsyncpa [#allocation5], 0  ;;  %s224_s9 = smov [#allocation3]  }
   0x3   :  { %s21_s10 = sshll.u32 %s224_s9, 4  ;;  %s22_s10 = int_to_ptr.vmem [resolvable:$true] %s21_s10 }
   0x4   :  { %s178_s11 = scalar_lea.vmem %s22_s10, 256  ;;  %p183_p1 = scmp.lt.s32.totalorder %s22_s10, %s22_s10 }
   0x5   :  { %p179_p0 = scmp.ne.s32.totalorder %s22_s10, %s178_s11  ;;  %p184_p2 = scmp.lt.s32.totalorder %s178_s11, %s178_s11 }
   0x7   :  { %p185_p3 = por %p184_p2, %p183_p1 }
   0x9   :  { %p186_p4 = pnand %p185_p3, %p179_p0 }
   0xb   :  { %189 = shalt.err (!%p186_p4)
}
   0xc   :  { %s225_s12 = smov 128   ;;  %s226_s13 = smov 8  }
   0xd   :  { %27 = dma.hbm_to_vmem [thread:$0]  %s254_s0, 256, %s22_s10, [#allocation4], %s225_s12, %s225_s12, %s226_s13  }
   0xe   :  { %s227_s16 = smov [#allocation6]  }
   0xf   :  { %s39_s17 = sshll.u32 %s227_s16, 4  ;;  %s40_s17 = int_to_ptr.vmem [resolvable:$true] %s39_s17 }
  0x10   :  { %s198_s18 = scalar_lea.vmem %s40_s17, 256  ;;  %p203_p6 = scmp.lt.s32.totalorder %s40_s17, %s40_s17 }
  0x11   :  { %p199_p5 = scmp.ne.s32.totalorder %s40_s17, %s198_s18  ;;  %p204_p7 = scmp.lt.s32.totalorder %s198_s18, %s198_s18 }
  0x13   :  { %p205_p8 = por %p204_p7, %p203_p6 }
  0x15   :  { %p206_p9 = pnand %p205_p8, %p199_p5 }
  0x17   :  { %209 = shalt.err (!%p206_p9)
}
  0x18   :  { %45 = dma.hbm_to_vmem [thread:$0]  %s255_s1, 256, %s40_s17, [#allocation7], %s225_s12, %s225_s12, %s226_s13  }
  0x19   :  { %218 = dma.done.wait [#allocation4], 256  }
  0x1a   :  { %219 = vsyncadd [#allocation4], 4294967040 }
  0x1b   :  { %220 = dma.done.wait [#allocation7], 256  }
  0x1c   :  { %221 = vsyncadd [#allocation7], 4294967040  ;;  %v65_v0 = vld [vmem:[#allocation3] sm:$0xff]  ;;  %v66_v1 = vld [vmem:[#allocation3 + $0x8] sm:$0xff]  ;;  %v228_v10 = vmov 0.3  }
  0x1d   :  { %v67_v2 = vld [vmem:[#allocation6] sm:$0xff]  ;;  %v68_v3 = vld [vmem:[#allocation6 + $0x8] sm:$0xff]  ;;  %v71_v4 = vsub.f32 1.0, %v65_v0  ;;  %v72_v5 = vsub.f32 1.0, %v66_v1  ;;  %s229_s1 = smov [#allocation8]  }
  0x1e   :  { %vm69_vm0 = vcmp.gt.s32.totalorder %v67_v2, 0  ;;  %vm70_vm1 = vcmp.gt.s32.totalorder %v68_v3, 0 }
  0x1f   :  { %v73_v6 = vsel %vm69_vm0, %v65_v0, %v71_v4  ;;  %v74_v7 = vsel %vm70_vm1, %v66_v1, %v72_v5  ;;  %v77_v11 = vsel %vm69_vm0, 0.7, %v228_v10  ;;  %v78_v12 = vsel %vm70_vm1, 0.7, %v228_v10 }
  0x20   :  { %v75_v8 = vmax.f32 %v73_v6, 1e-06  ;;  %v76_v9 = vmax.f32 %v74_v7, 1e-06  ;;  %v86_v13 = vsub.f32 0.0, %v77_v11  ;;  %v87_v15 = vsub.f32 0.0, %v78_v12 }
  0x22   :  { %166 = vlog2.f32 %v75_v8 }
  0x23   :  { %168 = vlog2.f32 %v76_v9 }
  0x2f   :  { %v167_v14 = vpop.eup %166 }
  0x30   :  { %v169_v16 = vpop.eup %168  ;;  %v89_v17 = vmul.f32 0.6931472, %v167_v14 }
  0x31   :  { %v91_v18 = vmul.f32 0.6931472, %v169_v16 }
  0x32   :  { %v92_v19 = vmul.f32 %v89_v17, %v86_v13 }
  0x33   :  { %v93_v20 = vmul.f32 %v91_v18, %v87_v15 }
  0x35   :  { %v95_v21 = vadd.f32 %v93_v20, %v92_v19 }
  0x37   :  { %128 = vadd.xlane.f32.xlu0 %v95_v21 }
  0xc0   :  { %v129_v22 = vpop.xlane.xlu0 %128 }
  0xc1   :  { %v130_v23 = vrot.slane %v129_v22, 4 }
  0xc3   :  { %v131_v24 = vadd.f32 %v130_v23, %v129_v22 }
  0xc5   :  { %v132_v25 = vrot.slane %v131_v24, 2 }
  0xc7   :  { %v133_v26 = vadd.f32 %v132_v25, %v131_v24 }
  0xc9   :  { %v134_v27 = vrot.slane %v133_v26, 1 }
  0xcb   :  { %v135_v28 = vadd.f32 %v134_v27, %v133_v26 }
  0xcd   :  { %158 = vpush %v135_v28 }
  0xfe   :  { %s159_s0 = spop %158 }
  0xff   :  { %138 = sst [smem:[#allocation8]] %s159_s0 }
 0x100   :  { %146 = dma.smem_to_hbm %s229_s1, 16, %s256_s2, [#allocation5]  }
 0x101   :  { %222 = dma.done.wait [#allocation5], 16  }
 0x102   :  { %223 = vsyncadd [#allocation5], 4294967280 }
 0x103   :  { %150 = sfence }
 0x104   :  { %151 = vsyncpa [#allocation4], 1 }
 0x105   :  { %152 = vsyncpa [#allocation7], 1 }
 0x106   :  { %153 = vsyncpa [#allocation5], 1 }

</bundles_post_ra>
